<compile_context>
chip_gen: v7x
topology: tpu7x:2x2x1
jax: 0.10.0
libtpu: 0.0.40
codegen_flags: <defaults>
</compile_context>

<pallas_src>
import jax
import jax.numpy as jnp
from jax.experimental import pallas as pl
from jax.experimental.pallas import tpu as pltpu


def _round_up(x, m):
    return ((x + m - 1) // m) * m


def _vmem_capacity_bytes():
    """Physical VMEM of the attached TPU; conservative (v7x-sized) fallback."""
    try:
        cap = int(pltpu.get_tpu_info().vmem_capacity_bytes)
        if cap > 0:
            return cap
    except Exception:
        pass
    return 64 * 1024 * 1024


def _step_vmem_bytes(Sc, TB, enc2, d_pad, S_pad, enc_itemsize):
    """Upper-bound VMEM footprint of one grid step (double-buffered pipeline)."""
    enc2_l = _round_up(enc2, 128)                      # lane padding of the 2E axis
    tb_s = _round_up(TB, 8)                            # sublane padding
    enc_in = 2 * Sc * tb_s * enc2_l * enc_itemsize     # pipelined encoder tile (x2 buffers)
    enc_bf16 = 0 if enc_itemsize == 2 else Sc * tb_s * enc2_l * 2   # in-kernel bf16 copy
    proj_e = Sc * tb_s * d_pad * 4                     # f32 MXU result
    energy = Sc * tb_s * d_pad * 4                     # f32 tanh intermediate
    out_t = 2 * tb_s * S_pad * 4                       # pipelined output tile (x2 buffers)
    scores = tb_s * S_pad * 4                          # softmax scratch
    weights = 2 * (enc2_l * d_pad * 2) + 2 * (8 * d_pad * 4) + 2 * (tb_s * d_pad * 4)
    return enc_in + enc_bf16 + proj_e + energy + out_t + scores + weights


def _pick_s_chunk(S, TB, enc2, d_pad, S_pad, enc_itemsize, budget):
    """Largest S chunk that fits the VMEM budget (whole S preferred)."""
    if _step_vmem_bytes(S, TB, enc2, d_pad, S_pad, enc_itemsize) <= budget:
        return S
    # Mandatory S-tiling for long src_len (v7x: 64 MiB VMEM).  Only chunks that
    # are multiples of 128 AND divide S are used, so the scratch writes stay
    # lane-aligned and no HBM padding of encoder_outputs is ever needed.
    best = 0
    cand = 128
    while cand < S and cand <= 8192:
        if S % cand == 0 and _step_vmem_bytes(cand, TB, enc2, d_pad, S_pad,
                                              enc_itemsize) <= budget:
            best = cand
        cand += 128
    if best:
        return best
    # TODO(synk): no 128-aligned divisor of S fits the budget (e.g. huge prime S);
    #             fall back to the whole slab and rely on the raised vmem limit.
    return S


def _make_attention_kernel(n_s_chunks):
    def kernel(proj_h_ref, enc_ref, we_ref, v_ref, out_ref, scores_ref):
        # Block shapes per grid step (bi, si):
        #   proj_h_ref: (TB, d_pad)       f32   hidden @ W_h + b, precomputed
        #   enc_ref:    (Sc, TB, 2E)      any   seq-major encoder slab (cast to bf16 here)
        #   we_ref:     (2E, d_pad)       bf16
        #   v_ref:      (1, d_pad)        f32
        #   out_ref:    (TB, S_pad)       f32   lane-dense, resident across the S axis
        #   scores_ref: (TB, S_pad)       f32   VMEM scratch, resident across the S axis
        s_idx = pl.program_id(1)
        Sc, TB, enc2 = enc_ref.shape
        d_pad = we_ref.shape[1]

        @pl.when(s_idx == 0)
        def _init():
            # Padded / not-yet-written lanes hold -1e30 so exp() underflows to exactly 0.
            scores_ref[...] = jnp.full(scores_ref.shape, -1e30, scores_ref.dtype)

        # One MXU matmul: bf16 operands, f32 accumulation.  The flatten is a
        # layout no-op when TB % 8 == 0 (2E is the full lane extent); for the
        # TB == B small-batch path the tile is tiny so a relayout is negligible.
        enc2d = enc_ref[...].reshape(Sc * TB, enc2).astype(jnp.bfloat16)
        proj_e = jnp.dot(enc2d, we_ref[...],
                         preferred_element_type=jnp.float32)          # (Sc*TB, d_pad)

        # energy[s, b, :] = tanh(enc_proj[s, b, :] + proj_h[b, :]).  Padded d
        # columns are exactly tanh(0) = 0 and multiply v == 0 below -> exact.
        # TODO(synk): on v6e/v7x, if the bundle dump shows the EUP (tanh) slot
        #             binding, compute tanh in bf16 for ~2x transcendental rate.
        energy = jnp.tanh(proj_e.reshape(Sc, TB, d_pad) + proj_h_ref[...][None, :, :])

        # scores[b, s] = <energy[s, b, :], v>  (lane reduction, then tiny transpose
        # so batch sits on sublanes and src_len on lanes).
        scores = jnp.sum(energy * v_ref[...][None, :, :], axis=-1).T   # (TB, Sc)

        if n_s_chunks == 1:
            scores_ref[:, :Sc] = scores                 # static lane slice
        else:
            # Sc % 128 == 0 by construction -> lane-aligned dynamic store.
            start = pl.multiple_of(s_idx * Sc, 128)
            scores_ref[:, pl.ds(start, Sc)] = scores

        @pl.when(s_idx == n_s_chunks - 1)
        def _finalize():
            sc = scores_ref[...]
            m = jnp.max(sc, axis=-1, keepdims=True)
            e = jnp.exp(sc - m)
            # Exact divide: the denominator is only (TB, 1) elements, so this is
            # essentially free and keeps each row summing to 1 to f32 precision.
            out_ref[...] = (e / jnp.sum(e, axis=-1, keepdims=True)).astype(out_ref.dtype)

    return kernel


def attention_forward(hidden, encoder_outputs, w_att, b_att, v_w):
    """hidden: [B, dec_hid]; encoder_outputs: [S, B, 2*enc_hid] (seq-major, f32 or bf16).

    w_att: [2*enc_hid + dec_hid, dec_hid]  (== torch atten.weight.T)
    b_att: [dec_hid]
    v_w:   [dec_hid]                       (== torch v.weight[0])
    Returns softmax attention weights [B, S] (softmax over src_len), float32.
    """
    S, B, enc2 = encoder_outputs.shape
    dec_hid = hidden.shape[1]

    # ---- Weight prep: split the concat weight (cat([h, enc]) @ W == h@W_h + enc@W_e)
    # and zero-pad dec_hid up to a lane-aligned width.  Exact (see kernel comment).
    d_pad = _round_up(dec_hid, 128)
    w_h = w_att[:dec_hid, :]
    w_e = w_att[dec_hid:, :]
    b, v = b_att, v_w
    if d_pad != dec_hid:
        w_h = jnp.pad(w_h, ((0, 0), (0, d_pad - dec_hid)))
        w_e = jnp.pad(w_e, ((0, 0), (0, d_pad - dec_hid)))
        b = jnp.pad(b, (0, d_pad - dec_hid))
        v = jnp.pad(v, (0, d_pad - dec_hid))

    # Hoisted hidden projection: one small batched XLA matmul for the whole batch.
    proj_h = (hidden.astype(jnp.float32) @ w_h.astype(jnp.float32)
              + b.astype(jnp.float32)[None, :])                       # [B, d_pad]
    w_e_bf16 = w_e.astype(jnp.bfloat16)
    v2d = v.reshape(1, d_pad).astype(jnp.float32)

    # ---- Tile selection.  encoder_outputs is never padded in HBM: TB is either a
    # multiple of 8 dividing B, or TB == B (full-extent block) for small/odd B.
    vmem_limit = max(32 * 1024 * 1024,
                     min((_vmem_capacity_bytes() * 3) // 4, 96 * 1024 * 1024))
    budget = (vmem_limit * 3) // 4
    enc_itemsize = jnp.dtype(encoder_outputs.dtype).itemsize
    S_pad = _round_up(S, 128)            # lane-dense output width (unmasked vst)

    if B % 8 == 0:
        TB = 8
        while TB * 2 <= 64 and B % (TB * 2) == 0:
            TB *= 2
        # Keep >= 2 batch grid steps when possible so both v7x TensorCores get work.
        while B // TB < 2 and TB >= 16:
            TB //= 2
        # Shrink TB if even a single 128-row S chunk would blow the VMEM budget.
        while TB > 8 and _step_vmem_bytes(min(S, 128), TB, enc2, d_pad, S_pad,
                                          enc_itemsize) > budget:
            TB //= 2
    else:
        TB = B                            # full-batch block, no HBM pad needed

    Sc = _pick_s_chunk(S, TB, enc2, d_pad, S_pad, enc_itemsize, budget)
    n_s = S // Sc

    grid = (B // TB, n_s)
    out = pl.pallas_call(
        _make_attention_kernel(n_s),
        out_shape=jax.ShapeDtypeStruct((B, S_pad), jnp.float32),
        grid_spec=pltpu.PrefetchScalarGridSpec(
            num_scalar_prefetch=0,
            grid=grid,
            in_specs=[
                pl.BlockSpec((TB, d_pad), lambda bi, si: (bi, 0)),         # proj_h
                pl.BlockSpec((Sc, TB, enc2), lambda bi, si: (si, bi, 0)),  # encoder (seq-major)
                pl.BlockSpec((enc2, d_pad), lambda bi, si: (0, 0)),        # W_e (bf16)
                pl.BlockSpec((1, d_pad), lambda bi, si: (0, 0)),           # v
            ],
            out_specs=pl.BlockSpec((TB, S_pad), lambda bi, si: (bi, 0)),
            scratch_shapes=[pltpu.VMEM((TB, S_pad), jnp.float32)],         # score accumulator
        ),
        compiler_params=pltpu.CompilerParams(
            dimension_semantics=("parallel", "arbitrary"),
            vmem_limit_bytes=vmem_limit,
        ),
    )(proj_h, encoder_outputs, w_e_bf16, v2d)

    return out[:, :S]


def _reference(hidden, encoder_outputs, w_att, b_att, v_w):
    S, B, _ = encoder_outputs.shape
    h_rep = jnp.repeat(hidden[:, None, :], S, axis=1)        # [B, S, dec_hid]
    enc = jnp.transpose(encoder_outputs, (1, 0, 2))          # [B, S, 2*enc_hid]
    cat = jnp.concatenate([h_rep, enc], axis=2)
    energy = jnp.tanh(cat @ w_att + b_att)                   # [B, S, dec_hid]
    att = jnp.einsum("bsd,d->bs", energy, v_w)               # [B, S]
    return jax.nn.softmax(att, axis=1)


if __name__ == "__main__":
    B, S = 2, 8
    enc_hid, dec_hid = 16, 32
    in_dim = 2 * enc_hid + dec_hid

    key = jax.random.PRNGKey(0)
    k1, k2, k3, k4, k5 = jax.random.split(key, 5)

    hidden = jax.random.normal(k1, (B, dec_hid), dtype=jnp.float32)
    encoder_outputs = jax.random.normal(k2, (S, B, 2 * enc_hid), dtype=jnp.float32)

    # Deterministic parameter init (mimics nn.Linear uniform bounds).
    bound_att = 1.0 / jnp.sqrt(jnp.float32(in_dim))
    w_att = jax.random.uniform(k3, (in_dim, dec_hid), jnp.float32, -bound_att, bound_att)
    b_att = jax.random.uniform(k4, (dec_hid,), jnp.float32, -bound_att, bound_att)
    bound_v = 1.0 / jnp.sqrt(jnp.float32(dec_hid))
    v_w = jax.random.uniform(k5, (dec_hid,), jnp.float32, -bound_v, bound_v)

    fwd = jax.jit(attention_forward)
    out = jax.block_until_ready(fwd(hidden, encoder_outputs, w_att, b_att, v_w))

    ref = _reference(hidden, encoder_outputs, w_att, b_att, v_w)
    assert out.shape == (B, S)
    # bf16 MXU operands (f32 accumulation) -> loosened value tolerance.
    assert bool(jnp.allclose(out, ref, atol=2e-2, rtol=2e-2)), float(jnp.max(jnp.abs(out - ref)))
    # Exact softmax divide -> rows sum to 1 to f32 precision.
    assert bool(jnp.allclose(jnp.sum(out, axis=-1), 1.0, atol=1e-4)), \
        float(jnp.max(jnp.abs(jnp.sum(out, axis=-1) - 1.0)))

    print("KERNEL_OK")
</pallas_src>

<mosaic_0001>
module attributes {stable_mosaic.version = 11 : i64} {
  func.func @kernel(%arg0: i32, %arg1: i32, %arg2: memref<2x128xf32, #tpu.memory_space<vmem>>, %arg3: memref<8x2x32xf32, #tpu.memory_space<vmem>>, %arg4: memref<32x128xbf16, #tpu.memory_space<vmem>>, %arg5: memref<1x128xf32, #tpu.memory_space<vmem>>, %arg6: memref<2x128xf32, #tpu.memory_space<vmem>>, %arg7: memref<2x128xf32, #tpu.memory_space<vmem>>) attributes {dimension_semantics = [#tpu.dimension_semantics<parallel>, #tpu.dimension_semantics<arbitrary>], iteration_bounds = array<i64: 1, 1>, scalar_prefetch = 0 : i64, scratch_operands = 1 : i64, tpu.core_type = #tpu.core_type<tc>, window_params = [{transform_indices = @transform_0, window_bounds = array<i64: 2, 128>}, {transform_indices = @transform_1, window_bounds = array<i64: 8, 2, 32>}, {pipeline_mode = #tpu.pipeline_mode<synchronous>, transform_indices = @transform_2, window_bounds = array<i64: 32, 128>}, {pipeline_mode = #tpu.pipeline_mode<synchronous>, transform_indices = @transform_3, window_bounds = array<i64: 1, 128>}, {transform_indices = @transform_4, window_bounds = array<i64: 2, 128>}]} {
    %c0_i32 = arith.constant 0 : i32
    %0 = arith.cmpi eq, %arg1, %c0_i32 : i32
    %1 = arith.extui %0 : i1 to i32
    %c0_i32_0 = arith.constant 0 : i32
    %2 = arith.cmpi ne, %1, %c0_i32_0 : i32
    scf.if %2 {
      %cst_14 = arith.constant -1.000000e+30 : f32
      %24 = vector.broadcast %cst_14 : f32 to vector<2x128xf32>
      %c0_15 = arith.constant 0 : index
      %c0_16 = arith.constant 0 : index
      %25 = vector.load %arg7[%c0_15, %c0_16] : memref<2x128xf32, #tpu.memory_space<vmem>>, vector<2x128xf32>
      tpu.vector_store %arg7[%c0_15, %c0_16], %24 {strides = array<i32>} : memref<2x128xf32, #tpu.memory_space<vmem>>, vector<2x128xf32>,
    } else {
    }
    %c0 = arith.constant 0 : index
    %c0_1 = arith.constant 0 : index
    %c0_2 = arith.constant 0 : index
    %3 = vector.load %arg3[%c0, %c0_1, %c0_2] : memref<8x2x32xf32, #tpu.memory_space<vmem>>, vector<8x2x32xf32>
    %4 = vector.shape_cast %3 : vector<8x2x32xf32> to vector<16x32xf32>
    %5 = arith.truncf %4 : vector<16x32xf32> to vector<16x32xbf16>
    %c0_3 = arith.constant 0 : index
    %c0_4 = arith.constant 0 : index
    %6 = vector.load %arg4[%c0_3, %c0_4] : memref<32x128xbf16, #tpu.memory_space<vmem>>, vector<32x128xbf16>
    %cst = arith.constant dense<0.000000e+00> : vector<16x128xf32>
    %7 = tpu.matmul %5, %6, %cst {dimension_numbers = #tpu.dot_dimension_numbers<[1], [0], [0], [1], [0, 0, 1, 1], [], []>} : vector<16x32xbf16>, vector<32x128xbf16>, vector<16x128xf32> -> vector<16x128xf32>
    %8 = vector.shape_cast %7 : vector<16x128xf32> to vector<8x2x128xf32>
    %c0_5 = arith.constant 0 : index
    %c0_6 = arith.constant 0 : index
    %9 = vector.load %arg2[%c0_5, %c0_6] : memref<2x128xf32, #tpu.memory_space<vmem>>, vector<2x128xf32>
    %10 = vector.shape_cast %9 : vector<2x128xf32> to vector<1x2x128xf32>
    %11 = vector.broadcast %10 : vector<1x2x128xf32> to vector<8x2x128xf32>
    %12 = arith.addf %8, %11 : vector<8x2x128xf32>
    %13 = math.tanh %12 : vector<8x2x128xf32>
    %c0_7 = arith.constant 0 : index
    %c0_8 = arith.constant 0 : index
    %14 = vector.load %arg5[%c0_7, %c0_8] : memref<1x128xf32, #tpu.memory_space<vmem>>, vector<1x128xf32>
    %15 = vector.shape_cast %14 : vector<1x128xf32> to vector<1x1x128xf32>
    %16 = vector.broadcast %15 : vector<1x1x128xf32> to vector<8x2x128xf32>
    %17 = arith.mulf %13, %16 : vector<8x2x128xf32>
    %cst_9 = arith.constant dense<0.000000e+00> : vector<8x2xf32>
    %18 = vector.multi_reduction <add>, %17, %cst_9 [2] : vector<8x2x128xf32> to vector<8x2xf32>
    %19 = tpu.transpose %18, [1, 0] : vector<8x2xf32> -> vector<2x8xf32>
    %c0_10 = arith.constant 0 : index
    %c0_11 = arith.constant 0 : index
    %20 = vector.load %arg7[%c0_10, %c0_11] : memref<2x128xf32, #tpu.memory_space<vmem>>, vector<2x8xf32>
    tpu.vector_store %arg7[%c0_10, %c0_11], %19 {strides = array<i32>} : memref<2x128xf32, #tpu.memory_space<vmem>>, vector<2x8xf32>,
    %c0_i32_12 = arith.constant 0 : i32
    %21 = arith.cmpi eq, %arg1, %c0_i32_12 : i32
    %22 = arith.extui %21 : i1 to i32
    %c0_i32_13 = arith.constant 0 : i32
    %23 = arith.cmpi ne, %22, %c0_i32_13 : i32
    scf.if %23 {
      %c0_14 = arith.constant 0 : index
      %c0_15 = arith.constant 0 : index
      %24 = vector.load %arg7[%c0_14, %c0_15] : memref<2x128xf32, #tpu.memory_space<vmem>>, vector<2x128xf32>
      %cst_16 = arith.constant dense<0xFF800000> : vector<2xf32>
      %25 = vector.multi_reduction <maximumf>, %24, %cst_16 [1] : vector<2x128xf32> to vector<2xf32>
      %26 = vector.shape_cast %25 : vector<2xf32> to vector<2x1xf32>
      %27 = vector.broadcast %26 : vector<2x1xf32> to vector<2x128xf32>
      %28 = arith.subf %24, %27 : vector<2x128xf32>
      %29 = math.exp %28 : vector<2x128xf32>
      %cst_17 = arith.constant dense<0.000000e+00> : vector<2xf32>
      %30 = vector.multi_reduction <add>, %29, %cst_17 [1] : vector<2x128xf32> to vector<2xf32>
      %31 = vector.shape_cast %30 : vector<2xf32> to vector<2x1xf32>
      %32 = vector.broadcast %31 : vector<2x1xf32> to vector<2x128xf32>
      %33 = arith.divf %29, %32 : vector<2x128xf32>
      %c0_18 = arith.constant 0 : index
      %c0_19 = arith.constant 0 : index
      %34 = vector.load %arg6[%c0_18, %c0_19] : memref<2x128xf32, #tpu.memory_space<vmem>>, vector<2x128xf32>
      tpu.vector_store %arg6[%c0_18, %c0_19], %33 {strides = array<i32>} : memref<2x128xf32, #tpu.memory_space<vmem>>, vector<2x128xf32>,
    } else {
    }
    return
  }
  func.func @transform_0(%arg0: i32, %arg1: i32) -> (i32, i32) {
    %c0_i32 = arith.constant 0 : i32
    %c0_i32_0 = arith.constant 0 : i32
    return %arg0, %c0_i32 : i32, i32
  }
  func.func @transform_1(%arg0: i32, %arg1: i32) -> (i32, i32, i32) {
    %c0_i32 = arith.constant 0 : i32
    %c0_i32_0 = arith.constant 0 : i32
    return %arg1, %arg0, %c0_i32 : i32, i32, i32
  }
  func.func @transform_2(%arg0: i32, %arg1: i32) -> (i32, i32) {
    %c0_i32 = arith.constant 0 : i32
    %c0_i32_0 = arith.constant 0 : i32
    %c0_i32_1 = arith.constant 0 : i32
    return %c0_i32, %c0_i32_0 : i32, i32
  }
  func.func @transform_3(%arg0: i32, %arg1: i32) -> (i32, i32) {
    %c0_i32 = arith.constant 0 : i32
    %c0_i32_0 = arith.constant 0 : i32
    %c0_i32_1 = arith.constant 0 : i32
    return %c0_i32, %c0_i32_0 : i32, i32
  }
  func.func @transform_4(%arg0: i32, %arg1: i32) -> (i32, i32) {
    %c0_i32 = arith.constant 0 : i32
    %c0_i32_0 = arith.constant 0 : i32
    return %arg0, %c0_i32 : i32, i32
  }
}

</mosaic_0001>

<bundles_post_ra>
// kernel: attention_forward.1
= control target key start
LH: loop header
LB: loop body
LE: loop exit
PB: predicated region body
PF: predicated region fallthrough
CT: control target
= control target key end

     0   :  { %v426_v1 = vmov 0.0   ;;  %v45_v3 = vlaneseq  ;;  %vm427_vm0 = vmmov 0   ;;  %v428_v12 = vmov 1983009808   ;;  %s520_s0 = inlined_call_operand.vmem [shape: f32[2,128], index: 0, kind: input, shape index: {}]   ;;  %s521_s1 = inlined_call_operand.vmem [shape: f32[8,2,32], index: 1, kind: input, shape index: {}]   ;;  %s522_s2 = inlined_call_operand.vmem [shape: bf16[32,128], index: 2, kind: input, shape index: {}]   ;;  %s523_s3 = inlined_call_operand.vmem [shape: f32[1,128], index: 3, kind: input, shape index: {}]   ;;  %s524_s4 = inlined_call_operand.hbm [shape: f32[2,128], index: 4, kind: output, shape index: {}]  }
   0x1   :  { %v380_v0 = vld [vmem:[%s522_s2] sm:$0xff]   ;;  %367 = vmatprep.subr.bf16.mxu0 %v426_v1  ;;  %v381_v2 = vld [vmem:[%s522_s2 + $0x8] sm:$0xff]   ;;  %371 = vmatprep.mubr.msk.bf16.mxu0 %vm427_vm0, %v426_v1  ;;  %v43_v13 = vunpack.c.l.s4 %v428_v12 }
   0x2   :  { %368 = vmatpush3.bf16.msra.mxu0 %v380_v0  ;;  %v24_v4 = vld [vmem:[%s521_s1] sm:$0x3]  ;;  %v25_v5 = vld [vmem:[%s521_s1 + $0x2] sm:$0x3]  ;;  %v26_v6 = vld [vmem:[%s521_s1 + $0x4] sm:$0x3] }
   0x3   :  { %369 = vmatprep.subr.bf16.mxu0 %v426_v1  ;;  %v27_v7 = vld [vmem:[%s521_s1 + $0x6] sm:$0x3]  ;;  %v28_v8 = vld [vmem:[%s521_s1 + $0x8] sm:$0x3]  ;;  %v29_v9 = vld [vmem:[%s521_s1 + $0xa] sm:$0x3] }
   0x4   :  { %v30_v10 = vld [vmem:[%s521_s1 + $0xc] sm:$0x3]  ;;  %v31_v11 = vld [vmem:[%s521_s1 + $0xe] sm:$0x3]  ;;  %v487_v14 = vshrl.u32 %v45_v3, 7 }
   0x5   :  { %9 = vsyncpa [#allocation4], 0  ;;  %v40_v15 = vcombine.low %v24_v4, %v25_v5  ;;  %v41_v16 = vcombine.low %v26_v6, %v27_v7  ;;  %v44_v17 = vunpack.c.0.s8 %v43_v13  ;;  %v57_v18 = vcombine.low %v28_v8, %v29_v9  ;;  %v182_v29 = vld [vmem:[%s520_s0] sm:$0x3] }
   0x6   :  { %370 = vmatpush3.bf16.msra.mxu0 %v381_v2  ;;  %v58_v19 = vcombine.low %v30_v10, %v31_v11  ;;  %vm93_vm1 = vcmask 261120   ;;  %v363_v51 = vld [vmem:[%s523_s3] ss:$0 sm:$0xff]  ;;  %vm214_vm2 = vcmask 1041408   ;;  %v248_v13 = vand.u32 127, %v45_v3  ;;  %s430_s3 = smov [#allocation3]  }
   0x7   :  { %v47_v20 = vsub.s32 %v44_v17, %v487_v14  ;;  %vm281_vm3 = vcmask 1041409   ;;  %vm283_vm4 = vcmask 1042434   ;;  %vm285_vm5 = vcmask 1043459   ;;  %s352_s10 = sshll.u32 %s430_s3, 4  ;;  %s353_s10 = int_to_ptr.vmem [resolvable:$true] %s352_s10 }
   0x8   :  { %vm287_vm6 = vcmask 1044484   ;;  %vm289_vm7 = vcmask 1045509   ;;  %vm291_vm8 = vcmask 1046534   ;;  %vm293_vm9 = vcmask 1047559   ;;  %s402_s11 = scalar_lea.vmem %s353_s10, 32  ;;  %p407_p1 = scmp.lt.s32.totalorder %s353_s10, %s353_s10 }
   0x9   :  { %v48_v21 = vrot.slane %v40_v15, %v47_v20  ;;  %v55_v22 = vrot.slane %v41_v16, %v47_v20  ;;  %v65_v23 = vrot.slane %v57_v18, %v47_v20  ;;  %v72_v24 = vrot.slane %v58_v19, %v47_v20  ;;  %p403_p0 = scmp.ne.s32.totalorder %s353_s10, %s402_s11  ;;  %p408_p2 = scmp.lt.s32.totalorder %s402_s11, %s402_s11 }
   0xa   :  { %v251_v16 = vsub.s32 %v248_v13, %v487_v14  ;;  %vm328_vm10 = vcmask 58368  }
   0xb   :  { %v56_v25 = vcombine.low %v48_v21, %v55_v22  ;;  %v73_v26 = vcombine.low %v65_v23, %v72_v24  ;;  %p409_p3 = por %p408_p2, %p407_p1 }
   0xd   :  { %v76_v27 = vpack.c.bf16 %v73_v26, %v56_v25  ;;  %p410_p4 = pnand %p409_p3, %p403_p0 }
   0xf   :  { %372 = vmatmul.mubr.msk.bf16.vlgmr.msra.gmra.mrb[0].mxu0 %vm93_vm1, %v76_v27 }
  0xe2   :  { %v131_v28 = vpop.f32.mrb[0].mxu0 }
  0xe3   :  { %v140_v30 = vcombine.high %v131_v28, %v131_v28  ;;  %v147_v31 = vrot.slane %v131_v28, %v47_v20  ;;  %v373_v32 = vpop.f32.mrb[1].mxu0 }
  0xe4   :  { %v134_v33 = vpop.f32.mrb[2].mxu0 }
  0xe5   :  { %v154_v34 = vrot.slane %v140_v30, %v47_v20  ;;  %v155_v35 = vcombine.high %v147_v31, %v147_v31  ;;  %v183_v36 = vadd.f32 %v182_v29, %v147_v31  ;;  %v157_v37 = vcombine.high %v134_v33, %v134_v33  ;;  %v374_v38 = vpop.f32.mrb[3].mxu0 }
  0xe6   :  { %v164_v39 = vrot.slane %v134_v33, %v47_v20 }
  0xe7   :  { %v156_v40 = vcombine.high %v154_v34, %v154_v34  ;;  %v184_v41 = vadd.f32 %v182_v29, %v155_v35  ;;  %v185_v42 = vadd.f32 %v182_v29, %v154_v34  ;;  %382 = vtanh.f32 %v183_v36 }
  0xe8   :  { %v171_v43 = vrot.slane %v157_v37, %v47_v20  ;;  %v172_v44 = vcombine.high %v164_v39, %v164_v39  ;;  %v187_v45 = vadd.f32 %v182_v29, %v164_v39  ;;  %v429_v37 = vmov -1e+30  }
  0xe9   :  { %v186_v46 = vadd.f32 %v182_v29, %v156_v40  ;;  %384 = vtanh.f32 %v184_v41  ;;  %23 = vst [vmem:[#allocation2] sm:$0x3] %v429_v37 }
  0xea   :  { %386 = vtanh.f32 %v185_v42  ;;  %v173_v47 = vcombine.high %v171_v43, %v171_v43  ;;  %v188_v48 = vadd.f32 %v182_v29, %v172_v44  ;;  %v189_v49 = vadd.f32 %v182_v29, %v171_v43 }
  0xeb   :  { %388 = vtanh.f32 %v186_v46 }
  0xec   :  { %390 = vtanh.f32 %v187_v45  ;;  %v190_v50 = vadd.f32 %v182_v29, %v173_v47 }
  0xed   :  { %392 = vtanh.f32 %v188_v48 }
  0xee   :  { %394 = vtanh.f32 %v189_v49 }
  0xef   :  { %396 = vtanh.f32 %v190_v50 }
  0xf1   :  { %v383_v52 = vpop.eup %382 }
  0xf2   :  { %v206_v53 = vmul.f32 %v383_v52, %v363_v51 }
  0xf3   :  { %v385_v54 = vpop.eup %384 }
  0xf4   :  { %v387_v55 = vpop.eup %386  ;;  %v215_v56 = vsel %vm214_vm2, %v206_v53, 0.0  ;;  %v207_v57 = vmul.f32 %v385_v54, %v363_v51 }
  0xf5   :  { %v389_v58 = vpop.eup %388  ;;  %216 = vadd.xlane.f32.xlu0 %v215_v56  ;;  %v208_v59 = vmul.f32 %v387_v55, %v363_v51 }
  0xf6   :  { %v391_v60 = vpop.eup %390  ;;  %v209_v62 = vmul.f32 %v389_v58, %v363_v51  ;;  %v218_v0 = vsel %vm214_vm2, %v207_v57, 0.0 }
  0xf7   :  { %v221_v61 = vsel %vm214_vm2, %v208_v59, 0.0  ;;  %v393_v63 = vpop.eup %392  ;;  %v210_v1 = vmul.f32 %v391_v60, %v363_v51 }
  0xf8   :  { %222 = vadd.xlane.f32.xlu1 %v221_v61  ;;  %v395_v2 = vpop.eup %394  ;;  %v224_v4 = vsel %vm214_vm2, %v209_v62, 0.0  ;;  %v211_v5 = vmul.f32 %v393_v63, %v363_v51 }
  0xf9   :  { %219 = vadd.xlane.f32.xlu0 %v218_v0  ;;  %v397_v6 = vpop.eup %396  ;;  %v227_v7 = vsel %vm214_vm2, %v210_v1, 0.0  ;;  %v212_v8 = vmul.f32 %v395_v2, %v363_v51 }
  0xfa   :  { %v230_v9 = vsel %vm214_vm2, %v211_v5, 0.0  ;;  %v213_v10 = vmul.f32 %v397_v6, %v363_v51 }
  0xfb   :  { %v233_v11 = vsel %vm214_vm2, %v212_v8, 0.0 }
  0xfc   :  { %225 = vadd.xlane.f32.xlu1 %v224_v4  ;;  %v236_v12 = vsel %vm214_vm2, %v213_v10, 0.0 }
  0xfd   :  { %228 = vadd.xlane.f32.xlu0 %v227_v7 }
 0x100   :  { %231 = vadd.xlane.f32.xlu1 %v230_v9 }
 0x101   :  { %234 = vadd.xlane.f32.xlu0 %v233_v11 }
 0x104   :  { %237 = vadd.xlane.f32.xlu1 %v236_v12 }
 0x182   :  { %v217_v15 = vpop.xlane.xlu0 %216 }
 0x183   :  { %v252_v19 = vrot.slane %v217_v15, %v251_v16 }
 0x185   :  { %v223_v17 = vpop.xlane.xlu1 %222 }
 0x186   :  { %v220_v18 = vpop.xlane.xlu0 %219  ;;  %v260_v21 = vrot.slane %v223_v17, %v251_v16 }
 0x187   :  { %v256_v20 = vrot.slane %v220_v18, %v251_v16 }
 0x189   :  { %v282_v22 = vsel %vm281_vm3, %v256_v20, %v252_v19  ;;  %v226_v23 = vpop.xlane.xlu1 %225 }
 0x18a   :  { %v284_v24 = vsel %vm283_vm4, %v260_v21, %v282_v22  ;;  %v264_v25 = vrot.slane %v226_v23, %v251_v16  ;;  %v229_v26 = vpop.xlane.xlu0 %228 }
 0x18b   :  { %v268_v27 = vrot.slane %v229_v26, %v251_v16 }
 0x18c   :  { %v286_v28 = vsel %vm285_vm5, %v264_v25, %v284_v24 }
 0x18d   :  { %v288_v3 = vsel %vm287_vm6, %v268_v27, %v286_v28  ;;  %v232_v29 = vpop.xlane.xlu1 %231 }
 0x18e   :  { %v272_v14 = vrot.slane %v232_v29, %v251_v16  ;;  %v235_v30 = vpop.xlane.xlu0 %234 }
 0x18f   :  { %v276_v31 = vrot.slane %v235_v30, %v251_v16 }
 0x190   :  { %v290_v32 = vsel %vm289_vm7, %v272_v14, %v288_v3 }
 0x191   :  { %v238_v33 = vpop.xlane.xlu1 %237  ;;  %v292_v34 = vsel %vm291_vm8, %v276_v31, %v290_v32 }
 0x192   :  { %v280_v35 = vrot.slane %v238_v33, %v251_v16 }
 0x194   :  { %v294_v36 = vsel %vm293_vm9, %v280_v35, %v292_v34 }
 0x195   :  { %296 = vxpose.xlu0.b32.start.end [1/1] (short) (narrow) %v294_v36, 8 }
 0x215   :  { %v312_v38 = vpop.trf.xlu0 }
 0x216   :  { %329 = vst.msk [vmem:[#allocation2] sm:$0x3] %vm328_vm10, %v312_v38 }
 0x21d   :  { %v333_v39 = vld [vmem:[#allocation2] sm:$0x3] }
 0x21e   :  { %v334_v40 = vsel %vm214_vm2, %v333_v39, -inf }
 0x21f   :  { %335 = vmax.xlane.f32.xlu1 %v334_v40 }
 0x2ac   :  { %v336_v41 = vpop.xlane.xlu1 %335 }
 0x2ad   :  { %v337_v42 = vsub.f32 %v333_v39, %v336_v41 }
 0x2af   :  { %v338_v43 = vmul.f32 1.442695, %v337_v42 }
 0x2b1   :  { %398 = vpow2.f32 %v338_v43 }
 0x2bb   :  { %v399_v44 = vpop.eup %398 }
 0x2bc   :  { %v340_v45 = vsel %vm214_vm2, %v399_v44, 0.0 }
 0x2bd   :  { %341 = vadd.xlane.f32.xlu1 %v340_v45 }
 0x34a   :  { %v342_v46 = vpop.xlane.xlu1 %341 }
 0x34b   :  { %400 = vrcp.f32 %v342_v46 }
 0x355   :  { %v401_v47 = vpop.eup %400 }
 0x356   :  { %v344_v48 = vmul.f32 %v401_v47, %v399_v44 }
 0x358   :  { %345 = vst [vmem:[#allocation3] sm:$0x3] %v344_v48 }
 0x359   :  { %413 = shalt.err (!%p410_p4)
}
 0x35a   :  { %s414_s14 = scalar_lea.hbm %s524_s4, 32 }
 0x35b   :  { %p415_p5 = scmp.ne.s32.totalorder %s524_s4, %s414_s14  ;;  %p418_p6 = scmp.lt.u32.totalorder %s414_s14, %s524_s4 }
 0x35d   :  { %p420_p7 = pnand %p418_p6, %p415_p5 }
 0x35f   :  { %423 = shalt.err (!%p420_p7)
}
 0x360   :  { %355 = dma.vmem_to_hbm [thread:$0]  %s353_s10, 32, %s524_s4, [#allocation4]  }
 0x361   :  { %424 = dma.done.wait [#allocation4], 32  }
 0x362   :  { %425 = vsyncadd [#allocation4], 4294967264 }
 0x363   :  { %359 = vsyncpa [#allocation4], 1 }

</bundles_post_ra>
